<compile_context>
chip_gen: v7x
topology: tpu7x:2x2x1
jax: 0.10.0
libtpu: 0.0.40
codegen_flags: <defaults>
</compile_context>

<pallas_src>
import jax
import jax.numpy as jnp
from jax.experimental import pallas as pl
from jax.experimental.pallas import tpu as pltpu


def _round_up(a, b):
    return (a + b - 1) // b * b


def _cdiv(a, b):
    return -(-a // b)


def _vmem_capacity_bytes():
    try:
        info = pltpu.get_tpu_info()
        cap = getattr(info, "vmem_capacity_bytes", None)
        if cap:
            return int(cap)
    except Exception:
        pass
    return 64 * 1024 * 1024  # conservative fallback = v7x per-TC VMEM


# --------------------------------------------------------------------------- kernels
def _swiglu_resident_kernel(x_ref, w12_ref, b12_ref, w3_ref, b3_ref, o_ref):
    # Whole hidden dim in one shot; weights are VMEM-resident across token tiles.
    th = w3_ref.shape[0]
    x = x_ref[...]  # native dtype operands; MXU accumulates in f32
    x12 = jnp.dot(x, w12_ref[...], preferred_element_type=jnp.float32)
    x12 = x12 + b12_ref[...].astype(jnp.float32)
    x1 = x12[:, :th]
    x2 = x12[:, th:]
    hidden = (x1 * jax.nn.sigmoid(x1)) * x2      # SiLU gating in f32 (EUP sigmoid)
    o_ref[...] = (jnp.dot(hidden.astype(w3_ref.dtype), w3_ref[...],
                          preferred_element_type=jnp.float32)
                  + b3_ref[...].astype(jnp.float32)).astype(o_ref.dtype)


def _swiglu_tiled_kernel(x_ref, w12_ref, b12_ref, w3_ref, b3_ref, o_ref, acc_ref):
    # Hidden axis tiled; partial down-projection products accumulated in f32 scratch.
    k = pl.program_id(1)
    th = w3_ref.shape[0]
    x = x_ref[...]
    x12 = jnp.dot(x, w12_ref[...], preferred_element_type=jnp.float32)
    x12 = x12 + b12_ref[...].astype(jnp.float32)
    x1 = x12[:, :th]
    x2 = x12[:, th:]
    hidden = (x1 * jax.nn.sigmoid(x1)) * x2
    partial = jnp.dot(hidden.astype(w3_ref.dtype), w3_ref[...],
                      preferred_element_type=jnp.float32)

    @pl.when(k == 0)
    def _():
        acc_ref[...] = partial          # write on first step (no zero-init + RMW)

    @pl.when(k > 0)
    def _():
        acc_ref[...] += partial

    @pl.when(k == pl.num_programs(1) - 1)
    def _():
        # dropout p=0.0 -> identity; ffn_ln -> identity
        o_ref[...] = (acc_ref[...] + b3_ref[...].astype(jnp.float32)).astype(o_ref.dtype)


# --------------------------------------------------------------------------- weights
def prepare_swiglu_weights(w1, b1, w2, b2, w3, b3, *, th_eff, h_pad, weight_dtype=None):
    """Pre-transpose, pad and fuse the SwiGLU weights for the kernel.

    Returns (w12, b12, w3_t, b3_2d) where w12 is tile-interleaved so that hidden
    block k (width 2*th_eff) holds [w1 cols of tile k | w2 cols of tile k].
    TODO(synk): hoist this out of the per-call forward path and cache in model state.
    """
    H, C = w1.shape
    O = w3.shape[0]
    w1_t = jnp.transpose(w1)          # (C, H)
    w2_t = jnp.transpose(w2)          # (C, H)
    w3_t = jnp.transpose(w3)          # (H, O)
    b1_2d = b1.reshape(1, H)
    b2_2d = b2.reshape(1, H)
    b3_2d = b3.reshape(1, O)
    if weight_dtype is not None:
        w1_t = w1_t.astype(weight_dtype)
        w2_t = w2_t.astype(weight_dtype)
        w3_t = w3_t.astype(weight_dtype)
    if h_pad != H:
        # Zero hidden-unit padding is an exact no-op: SiLU(0)*0 = 0 and the matching
        # zero rows of w3 contribute nothing.
        pad = h_pad - H
        w1_t = jnp.pad(w1_t, ((0, 0), (0, pad)))
        w2_t = jnp.pad(w2_t, ((0, 0), (0, pad)))
        b1_2d = jnp.pad(b1_2d, ((0, 0), (0, pad)))
        b2_2d = jnp.pad(b2_2d, ((0, 0), (0, pad)))
        w3_t = jnp.pad(w3_t, ((0, pad), (0, 0)))
    nk = h_pad // th_eff
    w12 = jnp.stack([w1_t.reshape(C, nk, th_eff),
                     w2_t.reshape(C, nk, th_eff)], axis=2).reshape(C, 2 * h_pad)
    b12 = jnp.stack([b1_2d.reshape(1, nk, th_eff),
                     b2_2d.reshape(1, nk, th_eff)], axis=2).reshape(1, 2 * h_pad)
    return w12, b12, w3_t, b3_2d


# --------------------------------------------------------------------------- forward
def swiglu_forward(x, w1, b1, w2, b2, w3, b3, *, tm=512, th=512, mode="auto",
                   compute_dtype=None, interpret=False):
    """x: (B, N, C).  w1, w2: (H, C) torch layout, w3: (O, H) torch layout."""
    assert mode in ("auto", "resident", "tiled")
    B, N, C = x.shape
    H = w1.shape[0]
    O = w3.shape[0]
    M = B * N
    out_dtype = x.dtype

    x2d = x.reshape(M, C)
    if compute_dtype is not None:
        x2d = x2d.astype(compute_dtype)
    w_dtype = compute_dtype if compute_dtype is not None else w1.dtype

    # Token tiling: big tiles for weight-stream arithmetic intensity, but keep at
    # least 2 token tiles so the "parallel" axis feeds both v7x TensorCores.
    num_i = _cdiv(M, tm)
    if num_i < 2 and M > 8:
        num_i = 2
    tm_eff = _round_up(_cdiv(M, num_i), 8)
    M_pad = num_i * tm_eff
    if M_pad != M:
        x2d = jnp.pad(x2d, ((0, M_pad - M), (0, 0)))

    xb = x2d.dtype.itemsize
    wb = jnp.dtype(w_dtype).itemsize
    ob = jnp.dtype(out_dtype).itemsize

    vmem_cap = _vmem_capacity_bytes()
    vmem_limit = int(min(vmem_cap, 128 * 1024 * 1024) * 0.85)   # leave headroom (v7x!)

    # Conservative (double-buffered) VMEM estimate if the full weights were resident.
    resident_bytes = 2 * (tm_eff * C * xb + tm_eff * O * ob
                          + 2 * C * H * wb + 2 * H * wb + H * O * wb + O * wb)
    use_resident = (mode == "resident") or (mode == "auto"
                                            and resident_bytes <= int(vmem_limit * 0.8))

    if use_resident:
        th_eff = H
        h_pad = H
        num_k = 1
    else:
        th_eff = min(th, H)
        if th_eff < H:
            th_eff = _round_up(th_eff, 128)     # keep hidden tiles lane-aligned
        h_pad = _round_up(H, th_eff)
        num_k = h_pad // th_eff

    w12, b12, w3_t, b3_2d = prepare_swiglu_weights(
        w1, b1, w2, b2, w3, b3, th_eff=th_eff, h_pad=h_pad, weight_dtype=compute_dtype)

    # Cost estimate: account for actual weight re-streaming in the tiled path.
    weight_bytes = (w12.size * w12.dtype.itemsize + w3_t.size * w3_t.dtype.itemsize
                    + b12.size * b12.dtype.itemsize + b3_2d.size * b3_2d.dtype.itemsize)
    weight_stream = weight_bytes * (1 if use_resident else num_i)
    flops = 2 * M_pad * (2 * C * h_pad + h_pad * O)
    cost = pl.CostEstimate(
        flops=flops,
        transcendentals=M_pad * h_pad,
        bytes_accessed=x2d.size * x2d.dtype.itemsize + weight_stream + M_pad * O * ob,
    )

    if use_resident:
        grid_spec = pltpu.PrefetchScalarGridSpec(
            num_scalar_prefetch=0,
            grid=(num_i,),
            in_specs=[
                pl.BlockSpec((tm_eff, C), lambda i: (i, 0)),        # x tile
                pl.BlockSpec((C, 2 * h_pad), lambda i: (0, 0)),     # fused w1||w2 (resident)
                pl.BlockSpec((1, 2 * h_pad), lambda i: (0, 0)),     # fused b1||b2
                pl.BlockSpec((h_pad, O), lambda i: (0, 0)),         # w3^T (resident)
                pl.BlockSpec((1, O), lambda i: (0, 0)),             # b3
            ],
            out_specs=pl.BlockSpec((tm_eff, O), lambda i: (i, 0)),
        )
        kernel = _swiglu_resident_kernel
        dims = ("parallel",)
    else:
        grid_spec = pltpu.PrefetchScalarGridSpec(
            num_scalar_prefetch=0,
            grid=(num_i, num_k),
            in_specs=[
                pl.BlockSpec((tm_eff, C), lambda i, k: (i, 0)),     # x tile
                pl.BlockSpec((C, 2 * th_eff), lambda i, k: (0, k)), # fused w1||w2 slice
                pl.BlockSpec((1, 2 * th_eff), lambda i, k: (0, k)), # fused b1||b2 slice
                pl.BlockSpec((th_eff, O), lambda i, k: (k, 0)),     # w3^T slice
                pl.BlockSpec((1, O), lambda i, k: (0, 0)),          # b3
            ],
            out_specs=pl.BlockSpec((tm_eff, O), lambda i, k: (i, 0)),
            scratch_shapes=[pltpu.VMEM((tm_eff, O), jnp.float32)],
        )
        kernel = _swiglu_tiled_kernel
        dims = ("parallel", "arbitrary")

    out2d = pl.pallas_call(
        kernel,
        out_shape=jax.ShapeDtypeStruct((M_pad, O), out_dtype),
        grid_spec=grid_spec,
        compiler_params=pltpu.CompilerParams(
            dimension_semantics=dims,
            vmem_limit_bytes=vmem_limit,
        ),
        cost_estimate=cost,
        interpret=interpret,
    )(x2d, w12, b12, w3_t, b3_2d)

    if M_pad != M:
        out2d = out2d[:M]
    return out2d.reshape(B, N, O)


# --------------------------------------------------------------------------- reference
def reference_swiglu(x, w1, b1, w2, b2, w3, b3):
    x1 = jnp.einsum("bnc,hc->bnh", x, w1) + b1
    x2 = jnp.einsum("bnc,hc->bnh", x, w2) + b2
    hidden = jax.nn.silu(x1) * x2
    return jnp.einsum("bnh,oh->bno", hidden, w3) + b3


if __name__ == "__main__":
    key = jax.random.PRNGKey(0)

    def init_linear(kw, kb, fan_out, fan_in):
        bound = 1.0 / (fan_in ** 0.5)
        w = jax.random.uniform(kw, (fan_out, fan_in), jnp.float32, -bound, bound)
        b = jax.random.uniform(kb, (fan_out,), jnp.float32, -bound, bound)
        return w, b

    # --- Test 1: small shapes consistent with the module defaults
    # (in_features=32, hidden_features=out_features=in_features). Exercises the
    # resident-weights path.
    B, N, C = 2, 8, 32
    H, O = C, C
    kx, k1, k2, k3, kb1, kb2, kb3, key = jax.random.split(key, 8)
    x = jax.random.normal(kx, (B, N, C), dtype=jnp.float32)
    w1, b1 = init_linear(k1, kb1, H, C)
    w2, b2 = init_linear(k2, kb2, H, C)
    w3, b3 = init_linear(k3, kb3, O, H)

    out = swiglu_forward(x, w1, b1, w2, b2, w3, b3)
    jax.block_until_ready(out)
    ref = reference_swiglu(x, w1, b1, w2, b2, w3, b3)
    assert out.shape == (B, N, O)
    assert jnp.allclose(out, ref, atol=1e-5, rtol=1e-5), "mismatch vs reference (resident)"

    # --- Test 2: lane-aligned shapes, forced hidden-tiled accumulator path
    # (multiple token tiles x multiple hidden tiles).
    B2, N2, C2, H2, O2 = 2, 96, 128, 256, 128
    kx, k1, k2, k3, kb1, kb2, kb3, key = jax.random.split(key, 8)
    x2 = jax.random.normal(kx, (B2, N2, C2), dtype=jnp.float32)
    w1b, b1b = init_linear(k1, kb1, H2, C2)
    w2b, b2b = init_linear(k2, kb2, H2, C2)
    w3b, b3b = init_linear(k3, kb3, O2, H2)

    out2 = swiglu_forward(x2, w1b, b1b, w2b, b2b, w3b, b3b, tm=64, th=128, mode="tiled")
    jax.block_until_ready(out2)
    ref2 = reference_swiglu(x2, w1b, b1b, w2b, b2b, w3b, b3b)
    assert out2.shape == (B2, N2, O2)
    assert jnp.allclose(out2, ref2, atol=2e-4, rtol=2e-4), "mismatch vs reference (tiled)"

    print("KERNEL_OK")
</pallas_src>

<mosaic_0001>
module attributes {stable_mosaic.version = 11 : i64} {
  func.func @_swiglu_resident_kernel(%arg0: i32, %arg1: memref<8x32xf32, #tpu.memory_space<vmem>>, %arg2: memref<32x64xf32, #tpu.memory_space<vmem>>, %arg3: memref<1x64xf32, #tpu.memory_space<vmem>>, %arg4: memref<32x32xf32, #tpu.memory_space<vmem>>, %arg5: memref<1x32xf32, #tpu.memory_space<vmem>>, %arg6: memref<8x32xf32, #tpu.memory_space<vmem>>) attributes {dimension_semantics = [#tpu.dimension_semantics<parallel>], iteration_bounds = array<i64: 2>, scalar_prefetch = 0 : i64, scratch_operands = 0 : i64, tpu.core_type = #tpu.core_type<tc>, window_params = [{transform_indices = @transform_0, window_bounds = array<i64: 8, 32>}, {pipeline_mode = #tpu.pipeline_mode<synchronous>, transform_indices = @transform_1, window_bounds = array<i64: 32, 64>}, {pipeline_mode = #tpu.pipeline_mode<synchronous>, transform_indices = @transform_2, window_bounds = array<i64: 1, 64>}, {pipeline_mode = #tpu.pipeline_mode<synchronous>, transform_indices = @transform_3, window_bounds = array<i64: 32, 32>}, {pipeline_mode = #tpu.pipeline_mode<synchronous>, transform_indices = @transform_4, window_bounds = array<i64: 1, 32>}, {transform_indices = @transform_5, window_bounds = array<i64: 8, 32>}]} {
    %c0 = arith.constant 0 : index
    %c0_0 = arith.constant 0 : index
    %0 = vector.load %arg1[%c0, %c0_0] : memref<8x32xf32, #tpu.memory_space<vmem>>, vector<8x32xf32>
    %c0_1 = arith.constant 0 : index
    %c0_2 = arith.constant 0 : index
    %1 = vector.load %arg2[%c0_1, %c0_2] : memref<32x64xf32, #tpu.memory_space<vmem>>, vector<32x64xf32>
    %cst = arith.constant dense<0.000000e+00> : vector<8x64xf32>
    %2 = tpu.matmul %0, %1, %cst {dimension_numbers = #tpu.dot_dimension_numbers<[1], [0], [0], [1], [0, 0, 1, 1], [], []>} : vector<8x32xf32>, vector<32x64xf32>, vector<8x64xf32> -> vector<8x64xf32>
    %c0_3 = arith.constant 0 : index
    %c0_4 = arith.constant 0 : index
    %3 = vector.load %arg3[%c0_3, %c0_4] : memref<1x64xf32, #tpu.memory_space<vmem>>, vector<1x64xf32>
    %4 = vector.broadcast %3 : vector<1x64xf32> to vector<8x64xf32>
    %5 = arith.addf %2, %4 : vector<8x64xf32>
    %6 = vector.extract_strided_slice %5 {offsets = [0, 0], sizes = [8, 32], strides = [1, 1]} : vector<8x64xf32> to vector<8x32xf32>
    %7 = vector.extract_strided_slice %5 {offsets = [0, 32], sizes = [8, 32], strides = [1, 1]} : vector<8x64xf32> to vector<8x32xf32>
    %8 = arith.negf %6 : vector<8x32xf32>
    %9 = math.exp %8 : vector<8x32xf32>
    %cst_5 = arith.constant 1.000000e+00 : f32
    %10 = vector.broadcast %cst_5 : f32 to vector<8x32xf32>
    %11 = arith.addf %10, %9 : vector<8x32xf32>
    %12 = arith.divf %10, %11 : vector<8x32xf32>
    %13 = arith.mulf %6, %12 : vector<8x32xf32>
    %14 = arith.mulf %13, %7 : vector<8x32xf32>
    %c0_6 = arith.constant 0 : index
    %c0_7 = arith.constant 0 : index
    %15 = vector.load %arg4[%c0_6, %c0_7] : memref<32x32xf32, #tpu.memory_space<vmem>>, vector<32x32xf32>
    %cst_8 = arith.constant dense<0.000000e+00> : vector<8x32xf32>
    %16 = tpu.matmul %14, %15, %cst_8 {dimension_numbers = #tpu.dot_dimension_numbers<[1], [0], [0], [1], [0, 0, 1, 1], [], []>} : vector<8x32xf32>, vector<32x32xf32>, vector<8x32xf32> -> vector<8x32xf32>
    %c0_9 = arith.constant 0 : index
    %c0_10 = arith.constant 0 : index
    %17 = vector.load %arg5[%c0_9, %c0_10] : memref<1x32xf32, #tpu.memory_space<vmem>>, vector<1x32xf32>
    %18 = vector.broadcast %17 : vector<1x32xf32> to vector<8x32xf32>
    %19 = arith.addf %16, %18 : vector<8x32xf32>
    %c0_11 = arith.constant 0 : index
    %c0_12 = arith.constant 0 : index
    %20 = vector.load %arg6[%c0_11, %c0_12] : memref<8x32xf32, #tpu.memory_space<vmem>>, vector<8x32xf32>
    tpu.vector_store %arg6[%c0_11, %c0_12], %19 {strides = array<i32>} : memref<8x32xf32, #tpu.memory_space<vmem>>, vector<8x32xf32>,
    return
  }
  func.func @transform_0(%arg0: i32) -> (i32, i32) {
    %c0_i32 = arith.constant 0 : i32
    %c0_i32_0 = arith.constant 0 : i32
    return %arg0, %c0_i32 : i32, i32
  }
  func.func @transform_1(%arg0: i32) -> (i32, i32) {
    %c0_i32 = arith.constant 0 : i32
    %c0_i32_0 = arith.constant 0 : i32
    %c0_i32_1 = arith.constant 0 : i32
    return %c0_i32, %c0_i32_0 : i32, i32
  }
  func.func @transform_2(%arg0: i32) -> (i32, i32) {
    %c0_i32 = arith.constant 0 : i32
    %c0_i32_0 = arith.constant 0 : i32
    %c0_i32_1 = arith.constant 0 : i32
    return %c0_i32, %c0_i32_0 : i32, i32
  }
  func.func @transform_3(%arg0: i32) -> (i32, i32) {
    %c0_i32 = arith.constant 0 : i32
    %c0_i32_0 = arith.constant 0 : i32
    %c0_i32_1 = arith.constant 0 : i32
    return %c0_i32, %c0_i32_0 : i32, i32
  }
  func.func @transform_4(%arg0: i32) -> (i32, i32) {
    %c0_i32 = arith.constant 0 : i32
    %c0_i32_0 = arith.constant 0 : i32
    %c0_i32_1 = arith.constant 0 : i32
    return %c0_i32, %c0_i32_0 : i32, i32
  }
  func.func @transform_5(%arg0: i32) -> (i32, i32) {
    %c0_i32 = arith.constant 0 : i32
    %c0_i32_0 = arith.constant 0 : i32
    return %arg0, %c0_i32 : i32, i32
  }
}

</mosaic_0001>

<bundles_post_ra>
// kernel: tpu_custom_call.1
= control target key start
LH: loop header
LB: loop body
LE: loop exit
PB: predicated region body
PF: predicated region fallthrough
CT: control target
= control target key end

     0   :  { %10 = vsyncpa [#allocation3], 0  ;;  %s1137_s0 = inlined_call_operand.hbm [shape: f32[16,32], index: 0, kind: input, shape index: {}]   ;;  %s1138_s1 = inlined_call_operand.hbm [shape: f32[32,64], index: 1, kind: input, shape index: {}]   ;;  %s1139_s2 = inlined_call_operand.vmem [shape: f32[1,64], index: 2, kind: input, shape index: {}]   ;;  %s1140_s3 = inlined_call_operand.hbm [shape: f32[32,32], index: 3, kind: input, shape index: {}]   ;;  %s1141_s4 = inlined_call_operand.vmem [shape: f32[1,32], index: 4, kind: input, shape index: {}]   ;;  %s1142_s5 = inlined_call_operand.hbm [shape: f32[16,32], index: 5, kind: output, shape index: {}]  }
   0x1   :  { %12 = vsyncpa [#allocation3 + $0x1], 0 }
   0x2   :  { %13 = vsyncpa [#allocation6], 0 }
   0x3   :  { %14 = vsyncpa [#allocation4], 0 }
   0x4   :  { %16 = vsyncpa [#allocation4 + $0x1], 0  ;;  %s895_s18 = smov 0   ;;  %s897_s19 = smov 0  }
   0x5   :  { %s899_s20 = smov 0   ;;  %s901_s21 = smov 0  }
   0x6 LB: > { %s916_s22 = sadd.s32 4294967295, %s853_s21   ;;  %s555_s23 = sadd.s32 4294967294, %s853_s21   ;;  %s853_s21 = sphi %s901_s21, %s1162_s21   ;;  %s849_s20 = sphi %s899_s20, %s1161_s20   ;;  %s845_s19 = sphi %s897_s19, %s1160_s19   ;;  %s841_s18 = sphi %s895_s18, %s1159_s18  }
   0x7   : > { %p42_p0 = scmp.ne.s32.totalorder %s845_s19, %s841_s18  ;;  %p1143_p1 = scmp.eq.s32.totalorder %s916_s22, 0 }
   0x8   : > { %p156_p3 = scmp.eq.s32.totalorder %s555_s23, 1  ;;  %p556_p5 = scmp.ge.s32.totalorder %s853_s21, 1 }
   0x9   : > { %p925_p4 = por %p1143_p1, %p42_p0  ;;  %p163_p7 = scmp.lt.s32.totalorder %s853_s21, 3 }
   0xa   : > { %p930_p6 = por %p156_p3, %p42_p0  ;;  %s855_s27 = smov [#allocation5]  }
   0xb   : > { %s1146_s24 = scalar_select %p925_p4, 1, 0 }
   0xc   : > { %s1147_s25 = scalar_select %p930_p6, 1, 0 }
   0xd   : > { %p935_p8 = pnand %p556_p5, %p163_p7  ;;  %s175_s28 = sshll.u32 %s855_s27, 4  ;;  %s939_s28 = int_to_ptr.vmem [resolvable:$true] %s175_s28 }
   0xe   : > { %s856_s30 = smov [#allocation7]   ;;  %s697_s9 = scalar_lea.hbm %s1138_s1, 512 }
   0xf   : > { %p632_p9 = pneg %p935_p8  ;;  %s191_s6 = sshll.u32 %s856_s30, 4  ;;  %s950_s6 = int_to_ptr.vmem [resolvable:$true] %s191_s6 }
  0x10   : > { %p698_p12 = scmp.ne.s32.totalorder %s1138_s1, %s697_s9  ;;  %p704_p5 = scmp.lt.u32.totalorder %s697_s9, %s1138_s1 }
  0x11   : > { %p946_p11 = pnand %p632_p9, %p1143_p1 }
  0x13   : > { %p699_p13 = pneg %p946_p11 }
  0x15   : > { %p700_p0 = pnand %p699_p13, %p698_p12 }
  0x17   : > { %p701_p3 = pneg %p700_p0 }
  0x19   : > { %p706_p7 = pnand %p704_p5, %p701_p3 }
  0x1b   : > { %709 = shalt.err (!%p706_p7)
}
  0x1c   : > { %s710_s14 = scalar_lea.vmem %s939_s28, 512  ;;  %p718_p2 = scmp.lt.s32.totalorder %s939_s28, %s939_s28 }
  0x1d   : > { %p711_p9 = scmp.ne.s32.totalorder %s939_s28, %s710_s14  ;;  %p719_p12 = scmp.lt.s32.totalorder %s710_s14, %s710_s14 }
  0x1f   : > { %p713_p10 = pnand %p711_p9, %p699_p13  ;;  %p720_p0 = por %p719_p12, %p718_p2 }
  0x21   : > { %p714_p1 = pneg %p713_p10 }
  0x23   : > { %p721_p6 = pnand %p720_p0, %p714_p1 }
  0x25   : > { %724 = shalt.err (!%p721_p6)
}
  0x26   : > { %s857_s15 = smov 128   ;;  %s858_s16 = smov 8  }
  0x27   : > { %635 = dma.hbm_to_vmem [thread:$0]  (!%p946_p11), %s1138_s1, 512, %s939_s28, [#allocation6], %s857_s15, %s857_s15, %s858_s16  }
  0x28   : > { %s725_s7 = scalar_lea.hbm %s1140_s3, 512 }
  0x29   : > { %p726_p2 = scmp.ne.s32.totalorder %s1140_s3, %s725_s7  ;;  %p732_p10 = scmp.lt.u32.totalorder %s725_s7, %s1140_s3 }
  0x2b   : > { %p728_p1 = pnand %p726_p2, %p699_p13 }
  0x2d   : > { %p729_p6 = pneg %p728_p1 }
  0x2f   : > { %p734_p3 = pnand %p732_p10, %p729_p6 }
  0x31   : > { %737 = shalt.err (!%p734_p3)
}
  0x32   : > { %s738_s28 = scalar_lea.vmem %s950_s6, 512  ;;  %p746_p12 = scmp.lt.s32.totalorder %s950_s6, %s950_s6 }
  0x33   : > { %p739_p5 = scmp.ne.s32.totalorder %s950_s6, %s738_s28  ;;  %p747_p0 = scmp.lt.s32.totalorder %s738_s28, %s738_s28 }
  0x35   : > { %p741_p7 = pnand %p739_p5, %p699_p13  ;;  %p748_p2 = por %p747_p0, %p746_p12 }
  0x37   : > { %p742_p9 = pneg %p741_p7 }
  0x39   : > { %p749_p1 = pnand %p748_p2, %p742_p9 }
  0x3b   : > { %752 = shalt.err (!%p749_p1)
}
  0x3c   : > { %638 = dma.hbm_to_vmem [thread:$0]  (!%p946_p11), %s1140_s3, 512, %s950_s6, [#allocation6], %s857_s15, %s857_s15, %s858_s16  }
  0x3d   : > { %s1005_s14 = sadd.s32 1, %s853_s21   ;;  %s29_s29 = sadd.s32 1, %s849_s20 }
  0x3e   : > { %s26_s17 = ssub.s32 %s853_s21, %s1005_s14  ;;  %p36_p13 = scmp.ne.s32.totalorder %s849_s20, %s845_s19 }
  0x3f   : > { %p27_p6 = scmp.eq.s32.totalorder %s26_s17, 0  ;;  %p37_p10 = scmp.eq.s32.totalorder %s853_s21, 0 }
  0x40   : > { %p1150_p3 = scmp.eq.s32.totalorder %s916_s22, 1  ;;  %p649_p7 = scmp.lt.s32.totalorder %s853_s21, 2 }
  0x41   : > { %s1021_s27 = scalar_select %p27_p6, %s849_s20, %s29_s29  }
  0x42   : > { %p1015_p5 = por %p1150_p3, %p36_p13  ;;  %p38_p9 = por %p37_p10, %p36_p13 }
  0x43   : > { %s208_s30 = sand.u32 1, %s849_s20   ;;  %s561_s6 = sshll.u32 %s853_s21, 7 }
  0x44   : > { %s1151_s23 = scalar_select %p1015_p5, 1, 0 }
  0x45   : > { %s560_s7 = sshll.u32 %s208_s30, 3  ;;  %s1028_s8 = scalar_lea.hbm %s1137_s0, %s561_s6 }
  0x46   : > { %s212_s9 = scalar_lea.vmem [#allocation2], %s560_s7  ;;  %p1032_p11 = pnand %p649_p7, %p38_p9 }
  0x47   : > { %s219_s10 = sshll.u32 %s212_s9, 4  ;;  %s209_s28 = scalar_lea.sflag [#allocation3], %s208_s30  ;;  %s1030_s10 = int_to_ptr.vmem [resolvable:$true] %s219_s10 }
  0x48   : > { %s753_s12 = scalar_lea.hbm %s1028_s8, 128  ;;  %p755_p0 = pneg %p1032_p11 }
  0x49   : > { %p754_p12 = scmp.ne.s32.totalorder %s1028_s8, %s753_s12  ;;  %s758_s17 = scalar_lea.hbm %s1137_s0, 256 }
  0x4a   : > { %p759_p13 = scmp.lt.u32.totalorder %s1028_s8, %s1137_s0  ;;  %p760_p6 = scmp.lt.u32.totalorder %s758_s17, %s753_s12 }
  0x4b   : > { %p756_p2 = pnand %p755_p0, %p754_p12  ;;  %p762_p3 = scmp.lt.u32.totalorder %s753_s12, %s1028_s8 }
  0x4c   : > { %p761_p10 = por %p760_p6, %p759_p13 }
  0x4d   : > { %p757_p1 = pneg %p756_p2 }
  0x4e   : > { %p763_p7 = por %p762_p3, %p761_p10 }
  0x50   : > { %p764_p9 = pnand %p763_p7, %p757_p1 }
  0x52   : > { %767 = shalt.err (!%p764_p9)
}
  0x53   : > { %s768_s30 = scalar_lea.vmem %s1030_s10, 128  ;;  %s859_s15 = smov [#allocation2]  }
  0x54   : > { %p769_p12 = scmp.ne.s32.totalorder %s1030_s10, %s768_s30  ;;  %s773_s16 = sshll.u32 %s859_s15, 4  ;;  %s774_s16 = int_to_ptr.vmem [resolvable:$false] %s773_s16 }
  0x55   : > { %s775_s9 = scalar_lea.vmem %s774_s16, 256  ;;  %p776_p4 = scmp.lt.s32.totalorder %s1030_s10, %s774_s16 }
  0x56   : > { %p771_p2 = pnand %p769_p12, %p755_p0  ;;  %p777_p13 = scmp.lt.s32.totalorder %s775_s9, %s768_s30 }
  0x58   : > { %p772_p5 = pneg %p771_p2  ;;  %p778_p6 = por %p777_p13, %p776_p4 }
  0x5a   : > { %p779_p10 = pnand %p778_p6, %p772_p5 }
  0x5c   : > { %782 = shalt.err (!%p779_p10)
}
  0x5d   : > { %642 = dma.hbm_to_vmem [thread:$0]  (!%p1032_p11), %s1028_s8, 128, %s1030_s10, %s209_s28  }
  0x5e   : > { %228 = sbr.rel (%p935_p8) target bundleno = 674 (0x2a2), region = 40  ;;  %s1064_s12 = sand.u32 (!%p935_p8), 1, %s845_s19  }
  0x5f   : > { %s563_s13 = sshll.u32 (!%p935_p8), %s1064_s12, 3  ;;  %s231_s29 = scalar_lea.sflag (!%p935_p8), [#allocation3], %s1064_s12 }
  0x60   : > { %s234_s17 = scalar_lea.vmem (!%p935_p8), [#allocation2], %s563_s13  ;;  %p1153_p4 = scmp.ne.s32.totalorder (!%p935_p8), %s1146_s24, 0 }
  0x65   : > { %828 = dma.done.wait (%p1153_p4), %s231_s29, 128  }
  0x66   : > { %830 = vsyncadd (%p1153_p4), %s231_s29, 4294967168  ;;  %p1154_p5 = scmp.eq.s32.totalorder %s916_s22, 0 }
  0x68   : > { %832 = dma.done.wait (%p1154_p5), [#allocation6], 1024   ;;  %p1155_p8 = pmov %p1154_p5 }
  0x69   : > { %v860_v0 = vmov 0.0|0.0   ;;  %vm861_vm0 = vmmov 0   ;;  %v862_v1 = vmov 0.0   ;;  %v270_v2 = vld [vmem:[#allocation5] sm:$0xff]  ;;  %v271_v3 = vld [vmem:[#allocation5 + $0x8] sm:$0xff]  ;;  %v272_v4 = vld [vmem:[#allocation5 + $0x10] sm:$0xff] }
  0x6a   : > { %834 = vsyncadd (%p1155_p8), [#allocation6], 4294966272  ;;  %608 = vmatprep.subr.bf16.mxu0 %v860_v0  ;;  %594 = vmatprep.mubr.msk.f32.mxu0 %vm861_vm0, %v862_v1  ;;  %v609_v5 = vpack.c.bf16 %v271_v3, %v270_v2  ;;  %v273_v6 = vld [vmem:[#allocation5 + $0x18] sm:$0xff]  ;;  %vm281_vm1 = vcmask 261120   ;;  %v367_v9 = vld [vmem:[#allocation7] sm:$0xff]  ;;  %s863_s8 = smov 96  }
  0x6b   : > { %614 = vmatprep.subr.bf16.mxu1 %v860_v0  ;;  %605 = vmatprep.mubr.msk.f32.mxu1 %vm861_vm0, %v862_v1  ;;  %v612_v7 = vpack.c.bf16 %v273_v6, %v272_v4  ;;  %v269_v8 = vld [vmem:[%s234_s17] sm:$0xff]  ;;  %v368_v10 = vld [vmem:[#allocation7 + $0x8] sm:$0xff]  ;;  %s573_s28 = sshll.u32 %s916_s22, 7  ;;  %s268_s7 = scalar_lea.vmem [#allocation8], %s563_s13 }
  0x6c   : > { %610 = vmatpush3.bf16.msra.mxu0 %v609_v5  ;;  %v615_v11 = vpack.c.bf16 %v368_v10, %v367_v9  ;;  %v369_v12 = vld [vmem:[#allocation7 + $0x10] sm:$0xff]  ;;  %v370_v13 = vld [vmem:[#allocation7 + $0x18] sm:$0xff]  ;;  %s466_s6 = sshll.u32 %s268_s7, 4  ;;  %s1092_s16 = scalar_lea.hbm %s1142_s5, %s573_s28  ;;  %s1094_s6 = int_to_ptr.vmem [resolvable:$true] %s466_s6 }
  0x6d   : > { %611 = vmatprep.subr.bf16.mxu0 %v860_v0  ;;  %v618_v14 = vpack.c.bf16 %v370_v13, %v369_v12  ;;  %v567_v15 = vld [vmem:[%s1139_s2] ss:$0 sm:$0xff]  ;;  %s453_s9 = scalar_lea.sflag [#allocation4], %s1064_s12  ;;  %s783_s22 = scalar_lea.vmem %s1094_s6, 128 }
  0x6e   : > { %616 = vmatpush3.bf16.msra.mxu1 %v615_v11  ;;  %v570_v26 = vld [vmem:[%s1141_s4] ss:$0 sm:$0xff]  ;;  %p784_p11 = scmp.ne.s32.totalorder %s1094_s6, %s783_s22  ;;  %p1156_p0 = scmp.ne.s32.totalorder %s1151_s23, 0 }
  0x6f   : > { %617 = vmatprep.subr.bf16.mxu1 %v860_v0  ;;  %s864_s13 = smov [#allocation8]  }
  0x70   : > { %613 = vmatpush3.bf16.msra.mxu0 %v612_v7  ;;  %p785_p1 = pnand %p784_p11, %p1156_p0  ;;  %s787_s29 = sshll.u32 %s864_s13, 4  ;;  %s788_s29 = int_to_ptr.vmem [resolvable:$false] %s787_s29 }
  0x71   : > { %s789_s17 = scalar_lea.vmem %s788_s29, 256  ;;  %p790_p7 = scmp.lt.s32.totalorder %s1094_s6, %s788_s29 }
  0x72   : > { %619 = vmatpush3.bf16.msra.mxu1 %v618_v14  ;;  %p786_p3 = pneg %p785_p1  ;;  %p791_p9 = scmp.lt.s32.totalorder %s789_s17, %s783_s22 }
  0x73   : > { %595 = vmatmul.mubr.msk.f32.vlgmr.msra.gmra.mrb[0].mxu0 %vm281_vm1, %v269_v8 }
  0x74   : > { %p792_p12 = por %p791_p9, %p790_p7 }
  0x76   : > { %p793_p2 = pnand %p792_p12, %p786_p3 }
 0x146   : > { %v351_v16 = vpop.f32.mrb[0].mxu0 }
 0x147   : > { %v352_v17 = vadd.f32 %v567_v15, %v351_v16  ;;  %v596_v18 = vpop.f32.mrb[1].mxu0 }
 0x149   : > { %363 = vrot.lane.b32.xlu0 %v352_v17, %s863_s8  ;;  %v569_v19 = vmul.f32 -1.442695, %v352_v17 }
 0x14b   : > { %693 = vpow2.f32 %v569_v19 }
 0x155   : > { %v694_v20 = vpop.eup %693 }
 0x156   : > { %v358_v21 = vadd.f32 1.0, %v694_v20 }
 0x158   : > { %695 = vrcp.f32 %v358_v21 }
 0x162   : > { %v696_v22 = vpop.eup %695 }
 0x163   : > { %v361_v23 = vmul.f32 %v696_v22, %v352_v17 }
 0x1bb   : > { %v364_v24 = vpop.permute.xlu0 %363 }
 0x1bc   : > { %v366_v25 = vmul.f32 %v364_v24, %v361_v23 }
 0x1be   : > { %606 = vmatmul.mubr.msk.f32.vlgmr.msra.gmra.mrb[0].mxu1 %vm281_vm1, %v366_v25 }
 0x291   : > { %v447_v27 = vpop.f32.mrb[0].mxu1 }
 0x292   : > { %v448_v28 = vadd.f32 %v570_v26, %v447_v27  ;;  %v607_v29 = vpop.f32.mrb[1].mxu1 }
 0x294   : > { %451 = vst.msk [vmem:[%s268_s7] sm:$0xff] %vm281_vm1, %v448_v28 }
 0x295   : > { %796 = shalt.err (!%p793_p2)
}
 0x296   : > { %s797_s12 = scalar_lea.hbm %s1092_s16, 128  ;;  %s801_s8 = scalar_lea.hbm %s1142_s5, 256 }
 0x297   : > { %p798_p13 = scmp.ne.s32.totalorder %s1092_s16, %s797_s12  ;;  %p802_p4 = scmp.lt.u32.totalorder %s1092_s16, %s1142_s5 }
 0x298   : > { %p803_p5 = scmp.lt.u32.totalorder %s801_s8, %s797_s12  ;;  %p805_p11 = scmp.lt.u32.totalorder %s797_s12, %s1092_s16 }
 0x299   : > { %p799_p6 = pnand %p798_p13, %p1156_p0 }
 0x29a   : > { %p804_p8 = por %p803_p5, %p802_p4 }
 0x29b   : > { %p800_p10 = pneg %p799_p6 }
 0x29c   : > { %p806_p1 = por %p805_p11, %p804_p8 }
 0x29e   : > { %p807_p3 = pnand %p806_p1, %p800_p10 }
 0x2a0   : > { %810 = shalt.err (!%p807_p3)
}
 0x2a1   : > { %630 = dma.vmem_to_hbm [thread:$0]  (%p1156_p0), %s1094_s6, 128, %s1092_s16, %s453_s9  }
 0x2a2 PF: > { %s478_s28 = sand.u32 1, %s841_s18   ;;  %p1157_p7 = scmp.ne.s32.totalorder %s1147_s25, 0 }
 0x2a3   : > { %p1158_p9 = scmp.ge.s32.totalorder %s853_s21, 2  ;;  %s479_s7 = scalar_lea.sflag [#allocation4], %s478_s28 }
 0x2a5   : > { %p644_p12 = pnand %p1158_p9, %p1157_p7 }
 0x2a7   : > { %836 = dma.done.wait (!%p644_p12), %s479_s7, 128  }
 0x2a8   : > { %838 = vsyncadd (!%p644_p12), %s479_s7, 4294967168  ;;  %p19_p2 = scmp.ge.s32.totalorder %s1005_s14, 4   ;;  %s1159_s18 = smov %s845_s19 }
 0x2a9   : > { %s1160_s19 = smov %s849_s20  ;;  %s1161_s20 = smov %s1021_s27 }
 0x2aa   : > { %s1162_s21 = smov %s1005_s14  ;;  %21 = sbr.rel (!%p19_p2) target bundleno = 6 (0x6), region = 93 }
 0x2b1   :  { %484 = vsyncpa [#allocation3], 1 }
 0x2b2   :  { %486 = vsyncpa [#allocation3 + $0x1], 1 }
 0x2b3   :  { %487 = vsyncpa [#allocation6], 1 }
 0x2b4   :  { %488 = vsyncpa [#allocation4], 1 }
 0x2b5   :  { %490 = vsyncpa [#allocation4 + $0x1], 1 }

</bundles_post_ra>
